<compile_context>
chip_gen: v6e
topology: v6e:2x2x1
jax: 0.10.0
libtpu: 0.0.40
codegen_flags: <defaults>
</compile_context>

<pallas_src>
import functools

import jax
import jax.numpy as jnp
from jax import lax
from jax.experimental import pallas as pl
from jax.experimental.pallas import tpu as pltpu


def _layernorm_kernel(x_ref, gamma_ref, beta_ref, o_ref, *, eps: float):
    # x_ref: (TILE_R, H)   gamma_ref/beta_ref: (1, H) float32   o_ref: (TILE_R, H)
    x = x_ref[...].astype(jnp.float32)
    h = x.shape[-1]
    inv_h = 1.0 / float(h)

    # Two-pass mean/variance in f32 (numerically safe; no pad-column mask is
    # needed because the block's last dim is exactly the true hidden width).
    mean = jnp.sum(x, axis=-1, keepdims=True) * inv_h
    xc = x - mean
    var = jnp.sum(xc * xc, axis=-1, keepdims=True) * inv_h  # biased var, like torch LayerNorm
    inv = lax.rsqrt(var + eps)                               # eps added in f32

    # gamma/beta arrive pre-upcast to f32 from the wrapper (no per-tile cast).
    o_ref[...] = ((xc * inv) * gamma_ref[...] + beta_ref[...]).astype(o_ref.dtype)


def _default_vmem_limit_bytes() -> int:
    """Generation-aware scoped-VMEM limit (conservative fallback if unknown)."""
    try:
        phys = int(pltpu.get_tpu_info().vmem_capacity_bytes)
    except Exception:
        phys = 64 * 1024 * 1024  # assume the smallest (v7x-like) VMEM if query fails
    if phys >= 100 * 1024 * 1024:      # v5e / v6e: 128 MiB physical
        return 96 * 1024 * 1024
    return 44 * 1024 * 1024            # v7x: 64 MiB physical, leave compiler headroom


def _pick_tile_rows(n_rows: int, h: int, io_bytes: int,
                    vmem_limit_bytes: int, sublane_mult: int) -> int:
    """Largest safe row tile: budgets double-buffered in/out tiles PLUS ~4
    full-tile f32 temporaries (upcast x, xc, xc*xc, pre-cast result)."""
    budget = max(vmem_limit_bytes - 6 * 1024 * 1024, 4 * 1024 * 1024)
    per_row_bytes = h * (2 * io_bytes + 2 * io_bytes + 4 * 4)
    max_rows_vmem = max(sublane_mult, budget // per_row_bytes)
    # Amortize the ~0.35us per-grid-step overhead by BYTES, not rows:
    # target ~4 MiB of input per tile, hard cap 4096 rows.
    target_rows = max(sublane_mult, (4 * 1024 * 1024) // max(1, h * io_bytes))
    tile = min(max_rows_vmem, target_rows, 4096)
    return max(sublane_mult, (tile // sublane_mult) * sublane_mult)


def quake_embedding_forward(inputs_embeds, gamma, beta, *, eps=1e-12,
                            tile_rows=None, vmem_limit_bytes=None):
    """LayerNorm(inputs_embeds) over the hidden dim, then eval-mode dropout (identity)."""
    B, S, H = inputs_embeds.shape
    R = B * S
    dtype = inputs_embeds.dtype
    io_bytes = jnp.dtype(dtype).itemsize
    sublane_mult = {4: 8, 2: 16, 1: 32}.get(io_bytes, 8)

    if vmem_limit_bytes is None:
        vmem_limit_bytes = _default_vmem_limit_bytes()

    if tile_rows is None:
        tile_rows = _pick_tile_rows(R, H, io_bytes, vmem_limit_bytes, sublane_mult)
    else:
        # Clamp user-supplied tiles to a dtype-safe sublane multiple.
        tile_rows = max(sublane_mult, (int(tile_rows) // sublane_mult) * sublane_mult)

    # If everything fits in one tile, make the block exactly R rows (legal:
    # block dim equals full array dim) so there is no ragged handling at all.
    if R <= tile_rows:
        tile_rows = R
    grid = pl.cdiv(R, tile_rows)

    # No padding, no post-slice: rows map to sublanes, hidden maps to lanes.
    x2d = inputs_embeds.reshape(R, H)
    gamma2d = gamma.reshape(1, H).astype(jnp.float32)
    beta2d = beta.reshape(1, H).astype(jnp.float32)

    out2d = pl.pallas_call(
        functools.partial(_layernorm_kernel, eps=eps),
        out_shape=jax.ShapeDtypeStruct((R, H), dtype),
        grid_spec=pl.GridSpec(
            grid=(grid,),
            in_specs=[
                pl.BlockSpec((tile_rows, H), lambda i: (i, 0)),  # x tile (ragged tail OK)
                pl.BlockSpec((1, H), lambda i: (0, 0)),          # gamma (broadcast, fetched once)
                pl.BlockSpec((1, H), lambda i: (0, 0)),          # beta  (broadcast, fetched once)
            ],
            out_specs=pl.BlockSpec((tile_rows, H), lambda i: (i, 0)),
        ),
        compiler_params=pltpu.CompilerParams(
            dimension_semantics=("parallel",),   # shard row-tiles across TCs (v7x megacore)
            vmem_limit_bytes=vmem_limit_bytes,
        ),
    )(x2d, gamma2d, beta2d)

    return out2d.reshape(B, S, H)


def _reference(inputs_embeds, gamma, beta, eps=1e-12):
    x = inputs_embeds.astype(jnp.float32)
    mean = jnp.mean(x, axis=-1, keepdims=True)
    var = jnp.mean((x - mean) ** 2, axis=-1, keepdims=True)
    y = (x - mean) / jnp.sqrt(var + eps) * gamma.astype(jnp.float32) + beta.astype(jnp.float32)
    return y.astype(inputs_embeds.dtype)


if __name__ == "__main__":
    eps = 1e-12  # config.layer_norm_eps (BERT default)
    key = jax.random.PRNGKey(0)
    k_x, k_g, k_b, k_x2, k_x3, k_g3, k_b3 = jax.random.split(key, 7)

    # Small shapes implied by the forward: inputs_embeds is (batch, seq, hidden).
    B, S, H = 2, 8, 32
    inputs_embeds = jax.random.normal(k_x, (B, S, H), dtype=jnp.float32)
    # nn.LayerNorm default init is weight=1, bias=0; perturb deterministically so
    # the affine part of the kernel is actually exercised.
    gamma = 1.0 + 0.1 * jax.random.normal(k_g, (H,), dtype=jnp.float32)
    beta = 0.1 * jax.random.normal(k_b, (H,), dtype=jnp.float32)

    out = jax.block_until_ready(quake_embedding_forward(inputs_embeds, gamma, beta, eps=eps))
    ref = _reference(inputs_embeds, gamma, beta, eps=eps)
    assert out.shape == (B, S, H)
    assert jnp.allclose(out, ref, atol=1e-5, rtol=1e-5), "mismatch vs reference LayerNorm"

    # Row count smaller than a sublane multiple (single full-array block).
    B2, S2 = 1, 5
    x2 = jax.random.normal(k_x2, (B2, S2, H), dtype=jnp.float32)
    out2 = jax.block_until_ready(quake_embedding_forward(x2, gamma, beta, eps=eps))
    ref2 = _reference(x2, gamma, beta, eps=eps)
    assert out2.shape == (B2, S2, H)
    assert jnp.allclose(out2, ref2, atol=1e-5, rtol=1e-5), "mismatch on tiny-row path"

    # Multi-tile grid with a ragged last block (R=600, tile_rows=256 -> grid 3).
    B3, S3, H3 = 3, 200, 128
    x3 = jax.random.normal(k_x3, (B3, S3, H3), dtype=jnp.float32)
    g3 = 1.0 + 0.1 * jax.random.normal(k_g3, (H3,), dtype=jnp.float32)
    b3 = 0.1 * jax.random.normal(k_b3, (H3,), dtype=jnp.float32)
    out3 = jax.block_until_ready(
        quake_embedding_forward(x3, g3, b3, eps=eps, tile_rows=256))
    ref3 = _reference(x3, g3, b3, eps=eps)
    assert out3.shape == (B3, S3, H3)
    assert jnp.allclose(out3, ref3, atol=1e-5, rtol=1e-5), "mismatch on ragged-tile path"

    print("KERNEL_OK")
</pallas_src>

<mosaic_0001>
module attributes {stable_mosaic.version = 11 : i64} {
  func.func @_layernorm_kernel(%arg0: i32, %arg1: memref<16x32xf32, #tpu.memory_space<vmem>>, %arg2: memref<1x32xf32, #tpu.memory_space<vmem>>, %arg3: memref<1x32xf32, #tpu.memory_space<vmem>>, %arg4: memref<16x32xf32, #tpu.memory_space<vmem>>) attributes {dimension_semantics = [#tpu.dimension_semantics<parallel>], iteration_bounds = array<i64: 1>, scalar_prefetch = 0 : i64, scratch_operands = 0 : i64, tpu.core_type = #tpu.core_type<tc>, window_params = [{transform_indices = @transform_0, window_bounds = array<i64: 16, 32>}, {pipeline_mode = #tpu.pipeline_mode<synchronous>, transform_indices = @transform_1, window_bounds = array<i64: 1, 32>}, {pipeline_mode = #tpu.pipeline_mode<synchronous>, transform_indices = @transform_2, window_bounds = array<i64: 1, 32>}, {transform_indices = @transform_3, window_bounds = array<i64: 16, 32>}]} {
    %c0 = arith.constant 0 : index
    %c0_0 = arith.constant 0 : index
    %0 = vector.load %arg1[%c0, %c0_0] : memref<16x32xf32, #tpu.memory_space<vmem>>, vector<16x32xf32>
    %cst = arith.constant dense<0.000000e+00> : vector<16xf32>
    %1 = vector.multi_reduction <add>, %0, %cst [1] : vector<16x32xf32> to vector<16xf32>
    %2 = vector.shape_cast %1 : vector<16xf32> to vector<16x1xf32>
    %cst_1 = arith.constant 3.125000e-02 : f32
    %3 = vector.broadcast %cst_1 : f32 to vector<16x1xf32>
    %4 = arith.mulf %2, %3 : vector<16x1xf32>
    %5 = vector.broadcast %4 : vector<16x1xf32> to vector<16x32xf32>
    %6 = arith.subf %0, %5 : vector<16x32xf32>
    %7 = arith.mulf %6, %6 : vector<16x32xf32>
    %cst_2 = arith.constant dense<0.000000e+00> : vector<16xf32>
    %8 = vector.multi_reduction <add>, %7, %cst_2 [1] : vector<16x32xf32> to vector<16xf32>
    %9 = vector.shape_cast %8 : vector<16xf32> to vector<16x1xf32>
    %cst_3 = arith.constant 3.125000e-02 : f32
    %10 = vector.broadcast %cst_3 : f32 to vector<16x1xf32>
    %11 = arith.mulf %9, %10 : vector<16x1xf32>
    %cst_4 = arith.constant 9.99999996E-13 : f32
    %12 = vector.broadcast %cst_4 : f32 to vector<16x1xf32>
    %13 = arith.addf %11, %12 : vector<16x1xf32>
    %14 = math.rsqrt %13 : vector<16x1xf32>
    %15 = vector.broadcast %14 : vector<16x1xf32> to vector<16x32xf32>
    %16 = arith.mulf %6, %15 : vector<16x32xf32>
    %c0_5 = arith.constant 0 : index
    %c0_6 = arith.constant 0 : index
    %17 = vector.load %arg2[%c0_5, %c0_6] : memref<1x32xf32, #tpu.memory_space<vmem>>, vector<1x32xf32>
    %18 = vector.broadcast %17 : vector<1x32xf32> to vector<16x32xf32>
    %19 = arith.mulf %16, %18 : vector<16x32xf32>
    %c0_7 = arith.constant 0 : index
    %c0_8 = arith.constant 0 : index
    %20 = vector.load %arg3[%c0_7, %c0_8] : memref<1x32xf32, #tpu.memory_space<vmem>>, vector<1x32xf32>
    %21 = vector.broadcast %20 : vector<1x32xf32> to vector<16x32xf32>
    %22 = arith.addf %19, %21 : vector<16x32xf32>
    %c0_9 = arith.constant 0 : index
    %c0_10 = arith.constant 0 : index
    %23 = vector.load %arg4[%c0_9, %c0_10] : memref<16x32xf32, #tpu.memory_space<vmem>>, vector<16x32xf32>
    tpu.vector_store %arg4[%c0_9, %c0_10], %22 {strides = array<i32>} : memref<16x32xf32, #tpu.memory_space<vmem>>, vector<16x32xf32>,
    return
  }
  func.func @transform_0(%arg0: i32) -> (i32, i32) {
    %c0_i32 = arith.constant 0 : i32
    %c0_i32_0 = arith.constant 0 : i32
    return %arg0, %c0_i32 : i32, i32
  }
  func.func @transform_1(%arg0: i32) -> (i32, i32) {
    %c0_i32 = arith.constant 0 : i32
    %c0_i32_0 = arith.constant 0 : i32
    %c0_i32_1 = arith.constant 0 : i32
    return %c0_i32, %c0_i32_0 : i32, i32
  }
  func.func @transform_2(%arg0: i32) -> (i32, i32) {
    %c0_i32 = arith.constant 0 : i32
    %c0_i32_0 = arith.constant 0 : i32
    %c0_i32_1 = arith.constant 0 : i32
    return %c0_i32, %c0_i32_0 : i32, i32
  }
  func.func @transform_3(%arg0: i32) -> (i32, i32) {
    %c0_i32 = arith.constant 0 : i32
    %c0_i32_0 = arith.constant 0 : i32
    return %arg0, %c0_i32 : i32, i32
  }
}

</mosaic_0001>

<bundles_post_ra>
// kernel: tpu_custom_call.1
= control target key start
LH: loop header
LB: loop body
LE: loop exit
PB: predicated region body
PF: predicated region fallthrough
CT: control target
= control target key end

     0   :  { %8 = vsyncpa [#allocation3], 0  ;;  %s197_s0 = inlined_call_operand.hbm [shape: f32[16,32], index: 0, kind: input, shape index: {}]   ;;  %s198_s1 = inlined_call_operand.vmem [shape: f32[1,32], index: 1, kind: input, shape index: {}]   ;;  %s199_s2 = inlined_call_operand.vmem [shape: f32[1,32], index: 2, kind: input, shape index: {}]   ;;  %s200_s3 = inlined_call_operand.hbm [shape: f32[16,32], index: 3, kind: output, shape index: {}]  }
   0x1   :  { %9 = vsyncpa [#allocation4], 0  ;;  %s149_s12 = smov [#allocation2]  }
   0x2   :  { %s15_s13 = sshll.u32 %s149_s12, 4  ;;  %s16_s13 = int_to_ptr.vmem [resolvable:$true] %s15_s13 }
   0x3   :  { %s113_s14 = scalar_lea.vmem %s16_s13, 256  ;;  %p118_p1 = scmp.lt.s32.totalorder %s16_s13, %s16_s13 }
   0x4   :  { %p114_p0 = scmp.ne.s32.totalorder %s16_s13, %s113_s14  ;;  %p119_p2 = scmp.lt.s32.totalorder %s113_s14, %s113_s14 }
   0x6   :  { %p120_p3 = por %p119_p2, %p118_p1 }
   0x8   :  { %p121_p4 = pnand %p120_p3, %p114_p0 }
   0xa   :  { %124 = shalt.err (!%p121_p4)
}
   0xb   :  { %s150_s15 = smov 128   ;;  %s151_s16 = smov 8  }
   0xc   :  { %21 = dma.hbm_to_vmem [thread:$0]  %s197_s0, 256, %s16_s13, [#allocation3], %s150_s15, %s150_s15, %s151_s16  }
   0xd   :  { %145 = dma.done.wait [#allocation3], 256  }
   0xe   :  { %146 = vsyncadd [#allocation3], 4294967040  ;;  %vm31_vm0 = vcmask 261120   ;;  %v29_v0 = vld [vmem:[#allocation2] sm:$0xff]  ;;  %v30_v1 = vld [vmem:[#allocation2 + $0x8] sm:$0xff]  ;;  %s152_s22 = smov [#allocation5]  }
   0xf   :  { %v32_v2 = vsel %vm31_vm0, %v29_v0, 0.0  ;;  %v35_v3 = vsel %vm31_vm0, %v30_v1, 0.0  ;;  %v95_v21 = vld [vmem:[%s198_s1] ss:$0 sm:$0xff]  ;;  %s83_s23 = sshll.u32 %s152_s22, 4  ;;  %s84_s23 = int_to_ptr.vmem [resolvable:$true] %s83_s23 }
  0x10   :  { %33 = vadd.xlane.f32.xlu0 %v32_v2  ;;  %v96_v23 = vld [vmem:[%s199_s2] ss:$0 sm:$0xff]  ;;  %s125_s24 = scalar_lea.vmem %s84_s23, 256  ;;  %p130_p6 = scmp.lt.s32.totalorder %s84_s23, %s84_s23 }
  0x11   :  { %p126_p5 = scmp.ne.s32.totalorder %s84_s23, %s125_s24  ;;  %p131_p7 = scmp.lt.s32.totalorder %s125_s24, %s125_s24 }
  0x13   :  { %p132_p8 = por %p131_p7, %p130_p6 }
  0x14   :  { %36 = vadd.xlane.f32.xlu0 %v35_v3 }
  0x15   :  { %p133_p9 = pnand %p132_p8, %p126_p5 }
  0x99   :  { %v34_v4 = vpop.xlane.xlu0 %33 }
  0x9a   :  { %v38_v5 = vmul.f32 0.03125, %v34_v4 }
  0x9c   :  { %v40_v6 = vsub.f32 %v29_v0, %v38_v5 }
  0x9d   :  { %v37_v7 = vpop.xlane.xlu0 %36 }
  0x9e   :  { %v39_v8 = vmul.f32 0.03125, %v37_v7  ;;  %v42_v9 = vmul.f32 %v40_v6, %v40_v6 }
  0xa0   :  { %v41_v10 = vsub.f32 %v30_v1, %v39_v8  ;;  %v44_v11 = vsel %vm31_vm0, %v42_v9, 0.0 }
  0xa1   :  { %45 = vadd.xlane.f32.xlu1 %v44_v11 }
  0xa2   :  { %v43_v12 = vmul.f32 %v41_v10, %v41_v10 }
  0xa4   :  { %v47_v13 = vsel %vm31_vm0, %v43_v12, 0.0 }
  0xa5   :  { %48 = vadd.xlane.f32.xlu1 %v47_v13 }
 0x12a   :  { %v46_v14 = vpop.xlane.xlu1 %45 }
 0x12b   :  { %v50_v15 = vmul.f32 0.03125, %v46_v14 }
 0x12d   :  { %v52_v16 = vadd.f32 1e-12, %v50_v15 }
 0x12e   :  { %v49_v17 = vpop.xlane.xlu1 %48 }
 0x12f   :  { %101 = vrsqrt.f32 %v52_v16  ;;  %v51_v18 = vmul.f32 0.03125, %v49_v17 }
 0x131   :  { %v53_v19 = vadd.f32 1e-12, %v51_v18 }
 0x133   :  { %103 = vrsqrt.f32 %v53_v19 }
 0x13c   :  { %v102_v20 = vpop.eup %101 }
 0x13d   :  { %v56_v22 = vmul.f32 %v102_v20, %v40_v6 }
 0x13f   :  { %v65_v24 = vmul.f32 %v95_v21, %v56_v22 }
 0x140   :  { %v104_v25 = vpop.eup %103 }
 0x141   :  { %v57_v26 = vmul.f32 %v104_v25, %v41_v10  ;;  %v74_v27 = vadd.f32 %v96_v23, %v65_v24 }
 0x143   :  { %v66_v28 = vmul.f32 %v95_v21, %v57_v26  ;;  %76 = vst.msk [vmem:[#allocation5] sm:$0xff] %vm31_vm0, %v74_v27 }
 0x145   :  { %v75_v29 = vadd.f32 %v96_v23, %v66_v28 }
 0x147   :  { %77 = vst.msk [vmem:[#allocation5 + $0x8] sm:$0xff] %vm31_vm0, %v75_v29 }
 0x148   :  { %136 = shalt.err (!%p133_p9)
}
 0x149   :  { %89 = dma.vmem_to_hbm [thread:$0]  %s84_s23, 256, %s200_s3, [#allocation4], %s150_s15, %s150_s15, %s151_s16  }
 0x14a   :  { %147 = dma.done.wait [#allocation4], 256  }
 0x14b   :  { %148 = vsyncadd [#allocation4], 4294967040 }
 0x14c   :  { %93 = vsyncpa [#allocation3], 1 }
 0x14d   :  { %94 = vsyncpa [#allocation4], 1 }

</bundles_post_ra>
